<compile_context>
chip_gen: v6e
topology: v6e:2x2x1
jax: 0.10.0
libtpu: 0.0.40
codegen_flags: <defaults>
</compile_context>

<pallas_src>
import functools
import math

import jax
import jax.numpy as jnp
from jax.experimental import pallas as pl
from jax.experimental.pallas import tpu as pltpu


_SUBLANE = {4: 8, 2: 16, 1: 32}            # dtype itemsize -> sublane packing
_LANE_CHOICES = (2048, 1024, 512, 256, 128)
_VMEM_BUDGET = 20 * 1024 * 1024            # double-buffered blocks, < scoped limit
_VMEM_LIMIT = 32 * 1024 * 1024             # explicit scoped-VMEM limit (v7x-safe)


def _cdiv(a: int, b: int) -> int:
    return -(-a // b)


def _round_up(x: int, m: int) -> int:
    return (x + m - 1) // m * m


def _bloch_kernel(x_ref, real_ref, imag_ref, *, w_theta_half, w_phi, fuse_phi):
    """Elementwise Bloch-sphere encoding of one (tile_rows, lanes) block.

    x_ref:    VMEM (tile_rows, lanes) embeddings
    real_ref: VMEM (tile_rows, lanes) cos(theta/2)
    imag_ref: VMEM (tile_rows, lanes) sin(theta/2) * cos(phi)
    w_theta_half = pi/2 * theta_weight, w_phi = 2*pi * phi_weight (baked consts).
    """
    x = x_ref[...].astype(jnp.float32)            # f32 math (v5e has no bf16 VPU/EUP)
    # sigmoid(x) = 0.5*(tanh(x/2)+1): one EUP op instead of exp + reciprocal.
    s = 0.5 * (jnp.tanh(0.5 * x) + 1.0)

    half_theta = jnp.float32(w_theta_half) * s
    cos_h = jnp.cos(half_theta)
    sin_h = jnp.sin(half_theta)

    if fuse_phi:
        # theta_weight == phi_weight  =>  phi = 4 * half_theta, so
        # cos(phi) = 2*(1 - 2*sin^2(theta/2))^2 - 1   (VPU only; saves one EUP op)
        c2 = 1.0 - 2.0 * (sin_h * sin_h)
        cos_phi = 2.0 * (c2 * c2) - 1.0
    else:
        cos_phi = jnp.cos(jnp.float32(w_phi) * s)

    real_ref[...] = cos_h.astype(real_ref.dtype)
    imag_ref[...] = (sin_h * cos_phi).astype(imag_ref.dtype)


@functools.partial(jax.jit, static_argnums=(1, 2, 3))
def _encode_impl(embeddings, theta_weight, phi_weight, max_tile_rows):
    batch, dim = embeddings.shape
    dtype = embeddings.dtype
    n = batch * dim
    isz = jnp.dtype(dtype).itemsize
    sub = _SUBLANE.get(isz, 8)

    # ---- geometry: zero-copy lane-dense view, no pad / no output slice ------
    lanes = next((l for l in _LANE_CHOICES if n % l == 0), None)
    if lanes is None:
        # Ragged size: tile the natural (batch, dim) array. A block lane dim
        # equal to the full `dim` is always legal; slightly masked stores beat
        # an extra pad + slice HBM pass.
        rows, lanes = batch, dim
        x2d = embeddings
    else:
        rows = n // lanes
        x2d = embeddings.reshape(rows, lanes)     # free bitcast under jit

    # ---- tile sizing: ~1 MiB blocks, >=2 grid steps, VMEM-budgeted ----------
    bytes_per_row = 6 * lanes * isz               # 2x input + 2 * 2x outputs (dbl-buf)
    vmem_rows = max(sub, (_VMEM_BUDGET // bytes_per_row) // sub * sub)
    rows_1mib = max(sub, (1 << 20) // (lanes * isz))    # roofline plateaus ~1 MiB
    tile_rows = min(vmem_rows, max(rows_1mib, _cdiv(rows, 8)))
    min_steps = 2 if rows >= 2 * sub else 1       # >=2 steps => v7x can use both TCs
    tile_rows = min(tile_rows, _cdiv(rows, min_steps))
    if max_tile_rows is not None:
        tile_rows = min(tile_rows, max(sub, int(max_tile_rows)))
    if tile_rows >= rows:
        tile_rows = rows                          # one full block: any row count legal
    else:
        tile_rows = _round_up(tile_rows, sub)     # partial blocks: sublane-packed rows
    grid_steps = _cdiv(rows, tile_rows)

    fuse_phi = float(theta_weight) == float(phi_weight)
    kernel = functools.partial(
        _bloch_kernel,
        w_theta_half=0.5 * math.pi * float(theta_weight),
        w_phi=2.0 * math.pi * float(phi_weight),
        fuse_phi=fuse_phi)

    block = pl.BlockSpec((tile_rows, lanes), lambda i: (i, 0))
    real2d, imag2d = pl.pallas_call(
        kernel,
        out_shape=(jax.ShapeDtypeStruct((rows, lanes), dtype),
                   jax.ShapeDtypeStruct((rows, lanes), dtype)),
        grid=(grid_steps,),
        in_specs=[block],
        out_specs=(block, block),
        compiler_params=pltpu.CompilerParams(
            dimension_semantics=("parallel",),
            vmem_limit_bytes=_VMEM_LIMIT),
        cost_estimate=pl.CostEstimate(
            flops=int(12 * n),
            transcendentals=int((3 if fuse_phi else 4) * n),
            bytes_accessed=int(3 * n * isz)),
    )(x2d)

    real = real2d.reshape(batch, dim)
    imag = imag2d.reshape(batch, dim)
    # TODO(synk): fuse this element-level interleave into the kernel store;
    # Mosaic vector stores need unit lane stride and there is no lane-zip
    # primitive, so the (batch, dim, 2) pack stays as one fused XLA stack here.
    return jnp.stack([real, imag], axis=-1)


def bloch_sphere_encode(embeddings, theta_weight=1.0, phi_weight=1.0, *,
                        max_tile_rows=None):
    """Pallas implementation of BlochSphereEncoder.forward.

    Args:
      embeddings: (batch, embedding_dim) array.
      theta_weight, phi_weight: the two 1x1 Linear weights (static Python
        floats; the module initializes both to 1.0).
    Returns:
      (batch, embedding_dim, 2); last dim = [cos(theta/2), sin(theta/2)*cos(phi)].
    """
    if embeddings.ndim != 2:
        raise ValueError(f"expected (batch, embedding_dim), got {embeddings.shape}")
    # TODO(synk): traced / learned theta/phi weights would need an SMEM scalar
    # operand; the module's weights are static floats so they are baked in.
    return _encode_impl(embeddings, float(theta_weight), float(phi_weight),
                        None if max_tile_rows is None else int(max_tile_rows))


def _reference(embeddings, theta_weight=1.0, phi_weight=1.0):
    s = jax.nn.sigmoid(embeddings.astype(jnp.float32))
    theta = math.pi * theta_weight * s
    phi = 2.0 * math.pi * phi_weight * s
    real = jnp.cos(theta / 2.0)
    imag = jnp.sin(theta / 2.0) * jnp.cos(phi)
    return jnp.stack([real, imag], axis=-1).astype(embeddings.dtype)


if __name__ == "__main__":
    key = jax.random.PRNGKey(0)
    k1, k2, k3, k4, k5 = jax.random.split(key, 5)

    # Module-sized example: batch=2, embedding_dim=32 (ragged fallback path).
    x = jax.random.normal(k1, (2, 32), dtype=jnp.float32)
    out = jax.block_until_ready(bloch_sphere_encode(x))
    ref = _reference(x)
    assert out.shape == (2, 32, 2), out.shape
    assert jnp.allclose(out, ref, atol=1e-5, rtol=1e-5), float(
        jnp.max(jnp.abs(out - ref)))

    # General (theta_weight != phi_weight) path: 4-transcendental branch.
    out_g = jax.block_until_ready(bloch_sphere_encode(x, 1.0, 0.5))
    assert jnp.allclose(out_g, _reference(x, 1.0, 0.5), atol=1e-5, rtol=1e-5)

    # Ragged shape (no 128-divisible lane width): natural (batch, dim) tiling.
    x2 = jax.random.normal(k2, (5, 193), dtype=jnp.float32)
    out2 = jax.block_until_ready(bloch_sphere_encode(x2))
    assert jnp.allclose(out2, _reference(x2), atol=1e-5, rtol=1e-5)

    # Lane-dense slab path with a forced multi-step grid (pipelining path).
    x3 = jax.random.normal(k3, (64, 512), dtype=jnp.float32)
    out3 = jax.block_until_ready(bloch_sphere_encode(x3, max_tile_rows=8))
    assert jnp.allclose(out3, _reference(x3), atol=1e-5, rtol=1e-5)

    # Non-divisible row count: exercises the padded trailing block.
    x4 = jax.random.normal(k4, (63, 512), dtype=jnp.float32)
    out4 = jax.block_until_ready(bloch_sphere_encode(x4))
    assert jnp.allclose(out4, _reference(x4), atol=1e-5, rtol=1e-5)

    # bf16 input: 16-row sublane packing path; loose tolerance (bf16 rounding).
    x5 = jax.random.normal(k5, (32, 256), dtype=jnp.float32).astype(jnp.bfloat16)
    out5 = jax.block_until_ready(bloch_sphere_encode(x5))
    assert out5.dtype == jnp.bfloat16
    assert jnp.allclose(out5.astype(jnp.float32),
                        _reference(x5).astype(jnp.float32), atol=5e-2)

    print("KERNEL_OK")
</pallas_src>

<mosaic_0001>
module attributes {stable_mosaic.version = 11 : i64} {
  func.func @_bloch_kernel(%arg0: i32, %arg1: memref<2x32xf32, #tpu.memory_space<vmem>>, %arg2: memref<2x32xf32, #tpu.memory_space<vmem>>, %arg3: memref<2x32xf32, #tpu.memory_space<vmem>>) attributes {dimension_semantics = [#tpu.dimension_semantics<parallel>], iteration_bounds = array<i64: 1>, scalar_prefetch = 0 : i64, scratch_operands = 0 : i64, tpu.core_type = #tpu.core_type<tc>, window_params = [{transform_indices = @transform_0, window_bounds = array<i64: 2, 32>}, {transform_indices = @transform_1, window_bounds = array<i64: 2, 32>}, {transform_indices = @transform_2, window_bounds = array<i64: 2, 32>}]} {
    %c0 = arith.constant 0 : index
    %c0_0 = arith.constant 0 : index
    %0 = vector.load %arg1[%c0, %c0_0] : memref<2x32xf32, #tpu.memory_space<vmem>>, vector<2x32xf32>
    %cst = arith.constant 5.000000e-01 : f32
    %1 = vector.broadcast %cst : f32 to vector<2x32xf32>
    %2 = arith.mulf %1, %0 : vector<2x32xf32>
    %3 = math.tanh %2 : vector<2x32xf32>
    %cst_1 = arith.constant 1.000000e+00 : f32
    %4 = vector.broadcast %cst_1 : f32 to vector<2x32xf32>
    %5 = arith.addf %3, %4 : vector<2x32xf32>
    %cst_2 = arith.constant 5.000000e-01 : f32
    %6 = vector.broadcast %cst_2 : f32 to vector<2x32xf32>
    %7 = arith.mulf %6, %5 : vector<2x32xf32>
    %cst_3 = arith.constant 1.57079637 : f32
    %8 = vector.broadcast %cst_3 : f32 to vector<2x32xf32>
    %9 = arith.mulf %8, %7 : vector<2x32xf32>
    %10 = math.cos %9 : vector<2x32xf32>
    %11 = math.sin %9 : vector<2x32xf32>
    %12 = arith.mulf %11, %11 : vector<2x32xf32>
    %cst_4 = arith.constant 2.000000e+00 : f32
    %13 = vector.broadcast %cst_4 : f32 to vector<2x32xf32>
    %14 = arith.mulf %13, %12 : vector<2x32xf32>
    %cst_5 = arith.constant 1.000000e+00 : f32
    %15 = vector.broadcast %cst_5 : f32 to vector<2x32xf32>
    %16 = arith.subf %15, %14 : vector<2x32xf32>
    %17 = arith.mulf %16, %16 : vector<2x32xf32>
    %cst_6 = arith.constant 2.000000e+00 : f32
    %18 = vector.broadcast %cst_6 : f32 to vector<2x32xf32>
    %19 = arith.mulf %18, %17 : vector<2x32xf32>
    %cst_7 = arith.constant 1.000000e+00 : f32
    %20 = vector.broadcast %cst_7 : f32 to vector<2x32xf32>
    %21 = arith.subf %19, %20 : vector<2x32xf32>
    %c0_8 = arith.constant 0 : index
    %c0_9 = arith.constant 0 : index
    %22 = vector.load %arg2[%c0_8, %c0_9] : memref<2x32xf32, #tpu.memory_space<vmem>>, vector<2x32xf32>
    tpu.vector_store %arg2[%c0_8, %c0_9], %10 {strides = array<i32>} : memref<2x32xf32, #tpu.memory_space<vmem>>, vector<2x32xf32>,
    %23 = arith.mulf %11, %21 : vector<2x32xf32>
    %c0_10 = arith.constant 0 : index
    %c0_11 = arith.constant 0 : index
    %24 = vector.load %arg3[%c0_10, %c0_11] : memref<2x32xf32, #tpu.memory_space<vmem>>, vector<2x32xf32>
    tpu.vector_store %arg3[%c0_10, %c0_11], %23 {strides = array<i32>} : memref<2x32xf32, #tpu.memory_space<vmem>>, vector<2x32xf32>,
    return
  }
  func.func @transform_0(%arg0: i32) -> (i32, i32) {
    %c0_i32 = arith.constant 0 : i32
    %c0_i32_0 = arith.constant 0 : i32
    return %arg0, %c0_i32 : i32, i32
  }
  func.func @transform_1(%arg0: i32) -> (i32, i32) {
    %c0_i32 = arith.constant 0 : i32
    %c0_i32_0 = arith.constant 0 : i32
    return %arg0, %c0_i32 : i32, i32
  }
  func.func @transform_2(%arg0: i32) -> (i32, i32) {
    %c0_i32 = arith.constant 0 : i32
    %c0_i32_0 = arith.constant 0 : i32
    return %arg0, %c0_i32 : i32, i32
  }
}

</mosaic_0001>

<bundles_post_ra>
// kernel: _encode_impl.1
= control target key start
LH: loop header
LB: loop body
LE: loop exit
PB: predicated region body
PF: predicated region fallthrough
CT: control target
= control target key end

     0   :  { %8 = vsyncpa [#allocation3], 0  ;;  %s302_s9 = smov [#allocation2]   ;;  %s354_s0 = inlined_call_operand.hbm [shape: f32[2,32], index: 0, kind: input, shape index: {}]   ;;  %s355_s1 = inlined_call_operand.vmem [shape: f32[2,32], index: 1, kind: output, shape index: {0}]   ;;  %s356_s2 = inlined_call_operand.vmem [shape: f32[2,32], index: 2, kind: output, shape index: {1}]  }
   0x1   :  { %s15_s10 = sshll.u32 %s302_s9, 4  ;;  %s16_s10 = int_to_ptr.vmem [resolvable:$true] %s15_s10 }
   0x2   :  { %s288_s11 = scalar_lea.vmem %s16_s10, 32  ;;  %p293_p1 = scmp.lt.s32.totalorder %s16_s10, %s16_s10 }
   0x3   :  { %p289_p0 = scmp.ne.s32.totalorder %s16_s10, %s288_s11  ;;  %p294_p2 = scmp.lt.s32.totalorder %s288_s11, %s288_s11 }
   0x5   :  { %p295_p3 = por %p294_p2, %p293_p1 }
   0x7   :  { %p296_p4 = pnand %p295_p3, %p289_p0 }
   0x9   :  { %299 = shalt.err (!%p296_p4)
}
   0xa   :  { %18 = dma.hbm_to_vmem [thread:$0]  %s354_s0, 32, %s16_s10, [#allocation3]  }
   0xb   :  { %300 = dma.done.wait [#allocation3], 32  }
   0xc   :  { %301 = vsyncadd [#allocation3], 4294967264  ;;  %v22_v0 = vld [vmem:[#allocation2] sm:$0x3]  ;;  %v303_v17 = vmov 683565275  }
   0xd   :  { %v23_v1 = vmul.f32 0.5, %v22_v0  ;;  %v304_v19 = vmov 2475754826   ;;  %v305_v21 = vmov 2131351028  }
   0xe   :  { %v306_v23 = vmov 2102212464   ;;  %v307_v25 = vmov 920167782   ;;  %v308_v32 = vmov 1326507024  }
   0xf   :  { %274 = vtanh.f32 %v23_v1 }
  0x1c   :  { %v275_v2 = vpop.eup %274 }
  0x1d   :  { %v25_v3 = vadd.f32 1.0, %v275_v2 }
  0x1f   :  { %v26_v4 = vmul.f32 0.5, %v25_v3 }
  0x21   :  { %v327_v5 = vmul.f32 1.5707964, %v26_v4 }
  0x23   :  { %v31_v6 = vand.u32 2139095040, %v327_v5  ;;  %v28_v8 = vand.u32 2147483647, %v327_v5  ;;  %vm30_vm7 = vcmp.lt.s32.totalorder %v327_v5, 0  ;;  %vm120_vm15 = vweird.f32 %v327_v5 }
  0x25   :  { %v32_v7 = vshrl.u32 %v31_v6, 23  ;;  %v35_v11 = vand.u32 8388607, %v28_v8  ;;  %vm29_vm8 = vcmp.le.f32.partialorder %v28_v8, 0.7853982 }
  0x27   :  { %v254_v9 = vadd.s32 4294967169, %v32_v7  ;;  %v36_v14 = vor.u32 8388608, %v35_v11 }
  0x29   :  { %v38_v10 = vadd.s32 1, %v254_v9  ;;  %v76_v34 = vshll.u32 %v36_v14, 8 }
  0x2b   :  { %vm39_vm0 = vcmp.gt.s32.totalorder %v38_v10, 0 }
  0x2c   :  { %v40_v12 = vsel %vm39_vm0, %v38_v10, 0  ;;  %vm241_vm0 = vcmask 254976  }
  0x2d   :  { %v42_v13 = vand.u32 31, %v40_v12  ;;  %v41_v15 = vshrl.u32 %v40_v12, 5 }
  0x2f   :  { %v43_v16 = vsub.s32 32, %v42_v13  ;;  %v45_v18 = vshll.u32 %v303_v17, %v42_v13  ;;  %v48_v20 = vshll.u32 %v304_v19, %v42_v13  ;;  %v51_v22 = vshll.u32 %v305_v21, %v42_v13 }
  0x30   :  { %v54_v24 = vshll.u32 %v306_v23, %v42_v13  ;;  %v57_v26 = vshll.u32 %v307_v25, %v42_v13  ;;  %vm60_vm1 = vcmp.lt.s32.totalorder %v41_v15, 1  ;;  %vm63_vm2 = vcmp.lt.s32.totalorder %v41_v15, 4 }
  0x31   :  { %v44_v27 = vshrl.u32 %v303_v17, %v43_v16  ;;  %v46_v28 = vshrl.u32 %v304_v19, %v43_v16  ;;  %v49_v29 = vshrl.u32 %v305_v21, %v43_v16  ;;  %v52_v30 = vshrl.u32 %v306_v23, %v43_v16 }
  0x32   :  { %v55_v31 = vshrl.u32 %v307_v25, %v43_v16  ;;  %v58_v33 = vshrl.u32 %v308_v32, %v43_v16  ;;  %vm61_vm3 = vcmp.lt.s32.totalorder %v41_v15, 2  ;;  %vm62_vm4 = vcmp.lt.s32.totalorder %v41_v15, 3 }
  0x33   :  { %v47_v35 = vor.u32 %v46_v28, %v45_v18  ;;  %v50_v36 = vor.u32 %v49_v29, %v48_v20  ;;  %v53_v37 = vor.u32 %v52_v30, %v51_v22 }
  0x34   :  { %v56_v38 = vor.u32 %v55_v31, %v54_v24  ;;  %v59_v39 = vor.u32 %v58_v33, %v57_v26 }
  0x35   :  { %v64_v40 = vsel %vm60_vm1, %v44_v27, %v47_v35  ;;  %v65_v41 = vsel %vm63_vm2, %v53_v37, 2102212464  ;;  %v68_v42 = vsel %vm60_vm1, %v47_v35, %v50_v36  ;;  %v72_v43 = vsel %vm60_vm1, %v50_v36, %v53_v37 }
  0x36   :  { %v66_v44 = vsel %vm62_vm4, %v50_v36, %v65_v41  ;;  %v69_v45 = vsel %vm63_vm2, %v56_v38, 920167782  ;;  %v73_v46 = vsel %vm63_vm2, %v59_v39, 1326507024 }
  0x37   :  { %v70_v47 = vsel %vm62_vm4, %v53_v37, %v69_v45  ;;  %v74_v48 = vsel %vm62_vm4, %v56_v38, %v73_v46  ;;  %v67_v49 = vsel %vm61_vm3, %v64_v40, %v66_v44 }
  0x38   :  { %v71_v50 = vsel %vm61_vm3, %v68_v42, %v70_v47  ;;  %v75_v51 = vsel %vm61_vm3, %v72_v43, %v74_v48  ;;  %v83_v56 = vmul.u32 %v76_v34, %v67_v49 }
  0x39   :  { %v333_v52 = vmul.u32.u64.low %v76_v34, %v75_v51  ;;  %v334_v53 = vmul.u32.u64.high %v76_v34, %v75_v51, %v333_v52  ;;  %v336_v54 = vmul.u32.u64.low %v76_v34, %v71_v50  ;;  %v337_v55 = vmul.u32.u64.high %v76_v34, %v71_v50, %v336_v54 }
  0x3b   :  { %vm85_vm5 = vc.u32 %v334_v53, %v336_v54  ;;  %v86_v57 = vadd.s32 1, %v337_v55  ;;  %v84_v4 = vadd.s32 %v336_v54, %v334_v53 }
  0x3d   :  { %v87_v58 = vsel %vm85_vm5, %v86_v57, %v337_v55 }
  0x3e   :  { %v88_v59 = vadd.s32 %v87_v58, %v83_v56 }
  0x40   :  { %v89_v60 = vadd.s32 536870912, %v88_v59 }
  0x42   :  { %v90_v61 = vshrl.u32 %v89_v60, 30 }
  0x44   :  { %v91_v62 = vshll.u32 %v90_v61, 30  ;;  %v114_v19 = vsub.s32 4, %v90_v61 }
  0x46   :  { %v92_v63 = vsub.s32 %v88_v59, %v91_v62  ;;  %v115_v22 = vsel %vm30_vm7, %v114_v19, %v90_v61 }
  0x47   :  { %v117_v24 = vsel %vm29_vm8, 0, %v115_v22 }
  0x48   :  { %v94_v0 = vsub.s32 0, %v92_v63  ;;  %v224_v25 = vadd.s32 3, %v117_v24  ;;  %v121_v26 = vand.u32 3, %v117_v24 }
  0x4a   :  { %v255_v1 = vmin.u32 %v94_v0, %v92_v63  ;;  %v225_v27 = vand.u32 3, %v224_v25  ;;  %vm126_vm9 = vcmp.eq.s32.totalorder %v121_v26, 2  ;;  %vm123_vm11 = vcmp.eq.s32.totalorder %v121_v26, 0 }
  0x4b   :  { %vm122_vm13 = vcmp.lt.s32.totalorder %v121_v26, 2 }
  0x4c   :  { %v96_v2 = vclz %v255_v1  ;;  %vm230_vm10 = vcmp.eq.s32.totalorder %v225_v27, 2  ;;  %vm227_vm12 = vcmp.eq.s32.totalorder %v225_v27, 0  ;;  %vm226_vm14 = vcmp.lt.s32.totalorder %v225_v27, 2 }
  0x4e   :  { %v256_v3 = vadd.s32 4294967294, %v96_v2 }
  0x50   :  { %vm257_vm6 = vcmp.lt.s32.totalorder %v256_v3, 0 }
  0x51   :  { %v99_v6 = vsel %vm257_vm6, 0, %v256_v3 }
  0x52   :  { %v100_v7 = vsub.s32 32, %v99_v6  ;;  %v101_v9 = vshll.u32 %v92_v63, %v99_v6  ;;  %v104_v10 = vsub.s32 4294967266, %v99_v6 }
  0x54   :  { %v102_v11 = vshrl.u32 %v84_v4, %v100_v7  ;;  %v105_v12 = vadd.s32 127, %v104_v10 }
  0x56   :  { %v103_v13 = vor.u32 %v102_v11, %v101_v9  ;;  %v106_v14 = vshll.u32 %v105_v12, 23 }
  0x58   :  { %v107_v15 = vor.u32 4788187, %v106_v14  ;;  %v110_v16 = vcvt.s32.f32 %v103_v13 }
  0x5a   :  { %v108_v17 = vand.u32 2147483647, %v107_v15 }
  0x5c   :  { %v111_v18 = vmul.f32 %v110_v16, %v108_v17 }
  0x5e   :  { %v112_v20 = vxor.u32 2147483648, %v111_v18 }
  0x60   :  { %v113_v21 = vsel %vm30_vm7, %v112_v20, %v111_v18 }
  0x61   :  { %v116_v23 = vsel %vm29_vm8, %v327_v5, %v113_v21 }
  0x62   :  { %276 = vcosq.f32 %v116_v23 }
  0x63   :  { %278 = vsinq.f32 %v116_v23 }
  0x6f   :  { %v277_v28 = vpop.eup %276 }
  0x70   :  { %v279_v29 = vpop.eup %278  ;;  %v127_v30 = vxor.u32 2147483648, %v277_v28 }
  0x71   :  { %v124_v8 = vxor.u32 2147483648, %v279_v29 }
  0x72   :  { %v128_v31 = vsel %vm126_vm9, %v127_v30, %v279_v29  ;;  %v232_v32 = vsel %vm230_vm10, %v127_v30, %v279_v29 }
  0x73   :  { %v125_v33 = vsel %vm123_vm11, %v277_v28, %v124_v8  ;;  %v229_v34 = vsel %vm227_vm12, %v277_v28, %v124_v8 }
  0x74   :  { %v129_v35 = vsel %vm122_vm13, %v125_v33, %v128_v31  ;;  %v233_v36 = vsel %vm226_vm14, %v229_v34, %v232_v32 }
  0x75   :  { %v130_v37 = vsel %vm120_vm15, nan, %v129_v35  ;;  %v234_v38 = vsel %vm120_vm15, nan, %v233_v36 }
  0x76   :  { %v235_v39 = vmul.f32 %v234_v38, %v234_v38  ;;  %242 = vst.msk [vmem:[%s355_s1] sm:$0x3] %vm241_vm0, %v130_v37 }
  0x78   :  { %v236_v40 = vmul.f32 2.0, %v235_v39 }
  0x7a   :  { %v237_v41 = vsub.f32 1.0, %v236_v40 }
  0x7c   :  { %v238_v42 = vmul.f32 %v237_v41, %v237_v41 }
  0x7e   :  { %v239_v43 = vmul.f32 2.0, %v238_v42 }
  0x80   :  { %v262_v44 = vadd.f32 -1.0, %v239_v43 }
  0x82   :  { %v243_v5 = vmul.f32 %v262_v44, %v234_v38 }
  0x84   :  { %244 = vst.msk [vmem:[%s356_s2] sm:$0x3] %vm241_vm0, %v243_v5 }
  0x85   :  { %253 = vsyncpa [#allocation3], 1 }

</bundles_post_ra>
